<compile_context>
chip_gen: v7x
topology: tpu7x:2x2x1
jax: 0.10.0
libtpu: 0.0.40
codegen_flags: <defaults>
</compile_context>

<pallas_src>
import functools

import jax
import jax.numpy as jnp
from jax.experimental import pallas as pl
from jax.experimental.pallas import tpu as pltpu


def _vmem_capacity_bytes() -> int:
    """Physical VMEM of this generation (fallback: conservative v7x-sized 64 MiB)."""
    try:
        info = pltpu.get_tpu_info()
        for name in ("vmem_capacity_bytes", "vmem_size_bytes", "vmem_bytes"):
            cap = getattr(info, name, None)
            if cap:
                return int(cap)
    except Exception:
        pass
    return 64 * 1024 * 1024


def _smooth_ce_kernel(logits_ref, tgt_ref, out_ref, cls_ids_ref, *,
                      eps, num_classes, tile_n, tiles_per_split, n_valid, needs_mask):
    """One (C, tn) tile: stable log-softmax + smoothed CE, lane-dense partial-sum accumulate."""
    i = pl.program_id(2)  # innermost ("arbitrary") spatial-tile axis

    @pl.when(i == 0)
    def _():
        out_ref[...] = jnp.zeros_like(out_ref)
        # Hoisted class-index iota (persists in VMEM across the tile loop).
        cls_ids_ref[...] = jax.lax.broadcasted_iota(jnp.int32, cls_ids_ref.shape, 0)

    x = logits_ref[...].astype(jnp.float32)                       # (C, TN)
    t = tgt_ref[...].astype(jnp.int32)                            # (1, TN)

    # Numerically stable log-sum-exp along the class (sublane) axis.
    m = jnp.max(x, axis=0, keepdims=True)                         # (1, TN)
    z = x - m                                                     # (C, TN), z <= 0
    lse = jnp.log(jnp.sum(jnp.exp(z), axis=0, keepdims=True))     # (1, TN)

    # Smoothed one-hot folded into a single weighted reduction:
    #   loss = lse - sum_c w_c * z_c,  w_c = eps/C + (1-eps)*[c == t]   (sum_c w_c == 1)
    w_miss = eps / num_classes
    w_hit = (1.0 - eps) + w_miss
    w = jnp.where(cls_ids_ref[...] == t, w_hit, w_miss)           # (C, TN)
    swz = jnp.sum(w * z, axis=0, keepdims=True)                   # (1, TN)

    per_elem = lse - swz                                          # (1, TN)

    if needs_mask:
        # Zero out lanes past the true spatial length (ragged last tile / padded N).
        start = (pl.program_id(1) * tiles_per_split + i) * tile_n
        pos = jax.lax.broadcasted_iota(jnp.int32, per_elem.shape, 1)
        per_elem = jnp.where(start + pos < n_valid, per_elem, 0.0)

    # Fold the tile's TN elements into 128 lane-parallel partial sums.
    # TODO(synk): if a bundle dump shows this reshape lowering to a large VMEM relayout,
    # replace it with an explicit strided slice-accumulate loop over 128-lane chunks.
    lane_sums = jnp.sum(per_elem.reshape(tile_n // 128, 128), axis=0)   # (128,)
    out_ref[...] = out_ref[...] + lane_sums.reshape(1, 1, 128)


def smooth_cross_entropy_loss(inputs, targets, eps: float = 0.1):
    """inputs: (B, C, *spatial) float; targets: (B, *spatial) int. Returns scalar loss."""
    batch_size = inputs.shape[0]
    num_classes = inputs.shape[1]

    # Glue (plain JAX): flatten spatial dims only — NO transpose / logits copy.
    x = inputs.reshape(batch_size, num_classes, -1)               # (B, C, N)
    n = x.shape[-1]
    # Keep the caller's integer dtype (int8/int16 targets cut HBM traffic at small C);
    # the kernel casts to int32 for the compare.
    t = targets.reshape(batch_size, 1, -1)                        # (B, 1, N)

    # Only pad when the spatial extent is smaller than one lane tile (tiny copy).
    n_pad = n
    if n < 128:
        n_pad = 128
        x = jnp.pad(x, ((0, 0), (0, 0), (0, n_pad - n)))
        t = jnp.pad(t, ((0, 0), (0, 0), (0, n_pad - n)))

    itemsize = jnp.dtype(x.dtype).itemsize
    vmem_cap = _vmem_capacity_bytes()
    if vmem_cap >= 128 * 1024 * 1024:        # v5e / v6e
        block_bytes = 4 * 1024 * 1024
        vmem_limit = 96 * 1024 * 1024
    else:                                    # v7x (64 MiB physical) or unknown
        block_bytes = 2 * 1024 * 1024
        vmem_limit = min(48 * 1024 * 1024, (vmem_cap * 3) // 4)

    # Byte-budget lane tile (mem-bound kernel): big blocks amortize per-step overhead
    # and give long contiguous per-row DMA runs.
    tn_target = max(128, ((block_bytes // (num_classes * itemsize)) // 128) * 128)
    # TODO(synk): for extremely large num_classes even tn=128 exceeds the block budget;
    # a class-dim-tiled (two-pass / online-lse) variant would be needed there.
    tn = min(tn_target, (n_pad // 128) * 128)
    n_tiles = pl.cdiv(n_pad, tn)

    # Second parallel grid axis so both v7x TensorCores stay busy when B is small/odd.
    splits = 2 if (batch_size % 2 == 1 and n_tiles % 2 == 0) else 1
    tiles_per_split = n_tiles // splits

    needs_mask = (n_tiles * tn != n)
    grid = (batch_size, splits, tiles_per_split)

    kernel = functools.partial(
        _smooth_ce_kernel,
        eps=float(eps), num_classes=num_classes, tile_n=tn,
        tiles_per_split=tiles_per_split, n_valid=n, needs_mask=needs_mask,
    )

    partials = pl.pallas_call(
        kernel,
        out_shape=jax.ShapeDtypeStruct((batch_size * splits, 1, 128), jnp.float32),
        grid_spec=pltpu.PrefetchScalarGridSpec(
            num_scalar_prefetch=0,
            grid=grid,
            in_specs=[
                # Squeezed batch dim -> kernel sees a (C, tn) logits tile.
                pl.BlockSpec((None, num_classes, tn),
                             lambda b, s, i: (b, 0, s * tiles_per_split + i)),
                # Squeezed batch dim -> kernel sees a (1, tn) integer target tile.
                pl.BlockSpec((None, 1, tn),
                             lambda b, s, i: (b, 0, s * tiles_per_split + i)),
            ],
            # Per-(batch, split) lane-dense accumulator, resident across the tile axis.
            out_specs=pl.BlockSpec((1, 1, 128),
                                   lambda b, s, i: (b * splits + s, 0, 0)),
            scratch_shapes=[pltpu.VMEM((num_classes, tn), jnp.int32)],
        ),
        compiler_params=pltpu.CompilerParams(
            dimension_semantics=("parallel", "parallel", "arbitrary"),
            vmem_limit_bytes=vmem_limit,
        ),
    )(x, t)

    total = jnp.sum(partials, dtype=jnp.float32)
    return (total / (batch_size * n)).astype(jnp.float32)


def _reference_loss(inputs, targets, eps=0.1):
    """Pure-JAX reference matching the PyTorch module semantics."""
    b, c = inputs.shape[0], inputs.shape[1]
    x = inputs.reshape(b, c, -1)
    t = targets.reshape(b, -1)
    one_hot = jax.nn.one_hot(t, c, dtype=jnp.float32).transpose(0, 2, 1)  # (B, C, N)
    smooth = one_hot * (1.0 - eps) + eps / c
    logp = jax.nn.log_softmax(x, axis=1)
    return -(smooth * logp).sum(axis=1).mean()


if __name__ == "__main__":
    key = jax.random.PRNGKey(0)
    k1, k2, k3, k4, k5, k6 = jax.random.split(key, 6)

    # Case 1: (B, C, H, W) image-style input, N = 256 (128-multiple): no masking.
    B, C, H, W = 2, 4, 16, 16
    x1 = jax.random.normal(k1, (B, C, H, W), dtype=jnp.float32)
    t1 = jax.random.randint(k2, (B, H, W), 0, C, dtype=jnp.int32)
    loss1 = jax.block_until_ready(smooth_cross_entropy_loss(x1, t1, eps=0.1))
    ref1 = _reference_loss(x1, t1, eps=0.1)
    assert jnp.allclose(loss1, ref1, rtol=1e-5, atol=1e-5), (loss1, ref1)

    # Case 2: ragged N (200) with B = 1: exercises tail masking, a partial last block,
    # and the extra parallel split axis (splits = 2).
    x2 = jax.random.normal(k3, (1, 5, 200), dtype=jnp.float32)
    t2 = jax.random.randint(k4, (1, 200), 0, 5, dtype=jnp.int32)
    loss2 = jax.block_until_ready(smooth_cross_entropy_loss(x2, t2, eps=0.2))
    ref2 = _reference_loss(x2, t2, eps=0.2)
    assert jnp.allclose(loss2, ref2, rtol=1e-5, atol=1e-5), (loss2, ref2)

    # Case 3: tiny N (< 128): exercises the wrapper lane-padding path.
    x3 = jax.random.normal(k5, (2, 3, 60), dtype=jnp.float32)
    t3 = jax.random.randint(k6, (2, 60), 0, 3, dtype=jnp.int32)
    loss3 = jax.block_until_ready(smooth_cross_entropy_loss(x3, t3, eps=0.1))
    ref3 = _reference_loss(x3, t3, eps=0.1)
    assert jnp.allclose(loss3, ref3, rtol=1e-5, atol=1e-5), (loss3, ref3)

    print("KERNEL_OK")
</pallas_src>

<mosaic_0001>
module attributes {stable_mosaic.version = 11 : i64} {
  func.func @_smooth_ce_kernel(%arg0: i32, %arg1: i32, %arg2: i32, %arg3: memref<1x4x256xf32, #tpu.memory_space<vmem>>, %arg4: memref<1x1x256xi32, #tpu.memory_space<vmem>>, %arg5: memref<1x1x128xf32, #tpu.memory_space<vmem>>, %arg6: memref<4x256xi32, #tpu.memory_space<vmem>>) attributes {dimension_semantics = [#tpu.dimension_semantics<parallel>, #tpu.dimension_semantics<parallel>, #tpu.dimension_semantics<arbitrary>], iteration_bounds = array<i64: 2, 1, 1>, scalar_prefetch = 0 : i64, scratch_operands = 1 : i64, tpu.core_type = #tpu.core_type<tc>, window_params = [{transform_indices = @transform_0, window_bounds = array<i64: 1, 4, 256>}, {transform_indices = @transform_1, window_bounds = array<i64: 1, 1, 256>}, {transform_indices = @transform_2, window_bounds = array<i64: 1, 1, 128>}]} {
    %c0_i32 = arith.constant 0 : i32
    %0 = arith.cmpi eq, %arg2, %c0_i32 : i32
    %1 = arith.extui %0 : i1 to i32
    %c0_i32_0 = arith.constant 0 : i32
    %2 = arith.cmpi ne, %1, %c0_i32_0 : i32
    scf.if %2 {
      %cst_19 = arith.constant 0.000000e+00 : f32
      %31 = vector.broadcast %cst_19 : f32 to vector<1x1x128xf32>
      %c0_20 = arith.constant 0 : index
      %c0_21 = arith.constant 0 : index
      %c0_22 = arith.constant 0 : index
      %32 = vector.load %arg5[%c0_20, %c0_21, %c0_22] : memref<1x1x128xf32, #tpu.memory_space<vmem>>, vector<1x1x128xf32>
      tpu.vector_store %arg5[%c0_20, %c0_21, %c0_22], %31 {strides = array<i32>} : memref<1x1x128xf32, #tpu.memory_space<vmem>>, vector<1x1x128xf32>,
      %33 = tpu.iota {dimensions = array<i32: 0>} : vector<4x256xi32>
      %c0_23 = arith.constant 0 : index
      %c0_24 = arith.constant 0 : index
      %34 = vector.load %arg6[%c0_23, %c0_24] : memref<4x256xi32, #tpu.memory_space<vmem>>, vector<4x256xi32>
      tpu.vector_store %arg6[%c0_23, %c0_24], %33 {strides = array<i32>} : memref<4x256xi32, #tpu.memory_space<vmem>>, vector<4x256xi32>,
    } else {
    }
    %c0 = arith.constant 0 : index
    %c0_1 = arith.constant 0 : index
    %c0_2 = arith.constant 0 : index
    %3 = vector.load %arg3[%c0, %c0_1, %c0_2] : memref<1x4x256xf32, #tpu.memory_space<vmem>>, vector<1x4x256xf32>
    %4 = vector.shape_cast %3 : vector<1x4x256xf32> to vector<4x256xf32>
    %c0_3 = arith.constant 0 : index
    %c0_4 = arith.constant 0 : index
    %c0_5 = arith.constant 0 : index
    %5 = vector.load %arg4[%c0_3, %c0_4, %c0_5] : memref<1x1x256xi32, #tpu.memory_space<vmem>>, vector<1x1x256xi32>
    %6 = vector.shape_cast %5 : vector<1x1x256xi32> to vector<1x256xi32>
    %cst = arith.constant dense<0xFF800000> : vector<256xf32>
    %7 = vector.multi_reduction <maximumf>, %4, %cst [0] : vector<4x256xf32> to vector<256xf32>
    %8 = vector.shape_cast %7 : vector<256xf32> to vector<1x256xf32>
    %9 = vector.broadcast %8 : vector<1x256xf32> to vector<4x256xf32>
    %10 = arith.subf %4, %9 : vector<4x256xf32>
    %11 = math.exp %10 : vector<4x256xf32>
    %cst_6 = arith.constant dense<0.000000e+00> : vector<256xf32>
    %12 = vector.multi_reduction <add>, %11, %cst_6 [0] : vector<4x256xf32> to vector<256xf32>
    %13 = vector.shape_cast %12 : vector<256xf32> to vector<1x256xf32>
    %14 = math.log %13 : vector<1x256xf32>
    %c0_7 = arith.constant 0 : index
    %c0_8 = arith.constant 0 : index
    %15 = vector.load %arg6[%c0_7, %c0_8] : memref<4x256xi32, #tpu.memory_space<vmem>>, vector<4x256xi32>
    %16 = vector.broadcast %6 : vector<1x256xi32> to vector<4x256xi32>
    %17 = arith.cmpi eq, %15, %16 : vector<4x256xi32>
    %cst_9 = arith.constant 9.250000e-01 : f32
    %cst_10 = arith.constant 2.500000e-02 : f32
    %18 = vector.broadcast %cst_9 : f32 to vector<4x256xf32>
    %19 = vector.broadcast %cst_10 : f32 to vector<4x256xf32>
    %20 = arith.select %17, %18, %19 : vector<4x256xi1>, vector<4x256xf32>
    %21 = arith.mulf %20, %10 : vector<4x256xf32>
    %cst_11 = arith.constant dense<0.000000e+00> : vector<256xf32>
    %22 = vector.multi_reduction <add>, %21, %cst_11 [0] : vector<4x256xf32> to vector<256xf32>
    %23 = vector.shape_cast %22 : vector<256xf32> to vector<1x256xf32>
    %24 = arith.subf %14, %23 : vector<1x256xf32>
    %25 = vector.shape_cast %24 : vector<1x256xf32> to vector<2x128xf32>
    %cst_12 = arith.constant dense<0.000000e+00> : vector<128xf32>
    %26 = vector.multi_reduction <add>, %25, %cst_12 [0] : vector<2x128xf32> to vector<128xf32>
    %c0_13 = arith.constant 0 : index
    %c0_14 = arith.constant 0 : index
    %c0_15 = arith.constant 0 : index
    %27 = vector.load %arg5[%c0_13, %c0_14, %c0_15] : memref<1x1x128xf32, #tpu.memory_space<vmem>>, vector<1x1x128xf32>
    %28 = vector.shape_cast %26 : vector<128xf32> to vector<1x1x128xf32>
    %29 = arith.addf %27, %28 : vector<1x1x128xf32>
    %c0_16 = arith.constant 0 : index
    %c0_17 = arith.constant 0 : index
    %c0_18 = arith.constant 0 : index
    %30 = vector.load %arg5[%c0_16, %c0_17, %c0_18] : memref<1x1x128xf32, #tpu.memory_space<vmem>>, vector<1x1x128xf32>
    tpu.vector_store %arg5[%c0_16, %c0_17, %c0_18], %29 {strides = array<i32>} : memref<1x1x128xf32, #tpu.memory_space<vmem>>, vector<1x1x128xf32>,
    return
  }
  func.func @transform_0(%arg0: i32, %arg1: i32, %arg2: i32) -> (i32, i32, i32) {
    %c1_i32 = arith.constant 1 : i32
    %0 = arith.muli %arg1, %c1_i32 : i32
    %1 = arith.addi %0, %arg2 : i32
    %c0_i32 = arith.constant 0 : i32
    %c0_i32_0 = arith.constant 0 : i32
    return %arg0, %c0_i32, %1 : i32, i32, i32
  }
  func.func @transform_1(%arg0: i32, %arg1: i32, %arg2: i32) -> (i32, i32, i32) {
    %c1_i32 = arith.constant 1 : i32
    %0 = arith.muli %arg1, %c1_i32 : i32
    %1 = arith.addi %0, %arg2 : i32
    %c0_i32 = arith.constant 0 : i32
    %c0_i32_0 = arith.constant 0 : i32
    return %arg0, %c0_i32, %1 : i32, i32, i32
  }
  func.func @transform_2(%arg0: i32, %arg1: i32, %arg2: i32) -> (i32, i32, i32) {
    %c1_i32 = arith.constant 1 : i32
    %0 = arith.muli %arg0, %c1_i32 : i32
    %1 = arith.addi %0, %arg1 : i32
    %c0_i32 = arith.constant 0 : i32
    %c0_i32_0 = arith.constant 0 : i32
    %c0_i32_1 = arith.constant 0 : i32
    return %1, %c0_i32, %c0_i32_0 : i32, i32, i32
  }
}

</mosaic_0001>

<bundles_post_ra>
// kernel: tpu_custom_call.1
= control target key start
LH: loop header
LB: loop body
LE: loop exit
PB: predicated region body
PF: predicated region fallthrough
CT: control target
= control target key end

     0   :  { %7 = vsyncpa [#allocation4], 0  ;;  %s978_s0 = inlined_call_operand.hbm [shape: f32[2,4,256], index: 0, kind: input, shape index: {}]   ;;  %s979_s1 = inlined_call_operand.hbm [shape: s32[2,1,256], index: 1, kind: input, shape index: {}]   ;;  %s980_s2 = inlined_call_operand.hbm [shape: f32[2,1,128], index: 2, kind: output, shape index: {}]  }
   0x1   :  { %9 = vsyncpa [#allocation4 + $0x1], 0 }
   0x2   :  { %10 = vsyncpa [#allocation7], 0 }
   0x3   :  { %12 = vsyncpa [#allocation7 + $0x1], 0 }
   0x4   :  { %13 = vsyncpa [#allocation5], 0 }
   0x5   :  { %15 = vsyncpa [#allocation5 + $0x1], 0  ;;  %s743_s9 = smov 0   ;;  %s745_s10 = smov 0  }
   0x6   :  { %s747_s11 = smov 0   ;;  %s749_s12 = smov 0  }
   0x7   :  { %s751_s13 = smov 0   ;;  %s753_s14 = smov 0  }
   0x8 LB: > { %s477_s15 = sadd.s32 4294967295, %s719_s14   ;;  %s478_s16 = sadd.s32 4294967294, %s719_s14   ;;  %s719_s14 = sphi %s753_s14, %s21_s14   ;;  %s715_s13 = sphi %s751_s13, %s1000_s13   ;;  %s711_s12 = sphi %s749_s12, %s999_s12   ;;  %s707_s11 = sphi %s747_s11, %s998_s11   ;;  %s703_s10 = sphi %s745_s10, %s997_s10   ;;  %s699_s9 = sphi %s743_s9, %s996_s9  }
   0x9   : > { %s40_s17 = sadd.s32 1, %s715_s13  ;;  %s51_s18 = sadd.s32 1, %s707_s11 }
   0xa   : > { %p42_p0 = scmp.ge.s32.totalorder %s40_s17, 2  ;;  %p58_p1 = scmp.ne.s32.totalorder %s707_s11, %s703_s10 }
   0xb   : > { %p59_p2 = scmp.eq.s32.totalorder %s719_s14, 0  ;;  %p64_p3 = scmp.ne.s32.totalorder %s703_s10, %s699_s9 }
   0xc   : > { %s1002_s17 = smov (%p42_p0, %s40_s17), 0  ;;  %p65_p5 = scmp.eq.s32.totalorder %s477_s15, 0 }
   0xd   : > { %p784_p4 = por %p59_p2, %p58_p1  ;;  %s46_s20 = ssub.s32 %s715_s13, %s1002_s17 }
   0xe   : > { %p120_p6 = scmp.eq.s32.totalorder %s477_s15, 1  ;;  %p49_p7 = scmp.eq.s32.totalorder %s46_s20, 0 }
   0xf   : > { %p790_p8 = por %p65_p5, %p64_p3  ;;  %p126_p10 = scmp.eq.s32.totalorder %s478_s16, 1 }
  0x10   : > { %p794_p9 = por %p120_p6, %p58_p1  ;;  %p512_p13 = scmp.lt.s32.totalorder %s719_s14, 2 }
  0x11   : > { %s984_s21 = scalar_select %p790_p8, 1, 0 }
  0x12   : > { %s985_s22 = scalar_select %p794_p9, 1, 0 }
  0x13   : > { %s799_s23 = scalar_select %p49_p7, %s707_s11, %s51_s18  }
  0x14   : > { %p801_p11 = por %p126_p10, %p64_p3  ;;  %s808_s25 = sand.u32 1, %s707_s11  }
  0x15   : > { %s481_s26 = sshll.u32 %s808_s25, 3  ;;  %s493_s27 = sshll.u32 %s715_s13, 7 }
  0x16   : > { %s986_s24 = scalar_select %p801_p11, 1, 0 }
  0x17   : > { %s815_s30 = scalar_lea.hbm %s978_s0, %s493_s27  ;;  %s150_s3 = scalar_lea.vmem [#allocation3], %s481_s26 }
  0x18   : > { %s161_s4 = sshll.u32 %s150_s3, 4  ;;  %p821_p0 = pnand %p512_p13, %p784_p4  ;;  %s817_s4 = int_to_ptr.vmem [resolvable:$true] %s161_s4 }
  0x19   : > { %s147_s6 = scalar_lea.sflag [#allocation4], %s808_s25  ;;  %s573_s7 = scalar_lea.hbm %s815_s30, 128 }
  0x1a   : > { %p574_p3 = scmp.ne.s32.totalorder %s815_s30, %s573_s7  ;;  %p575_p5 = pneg %p821_p0 }
  0x1b   : > { %s578_s16 = scalar_lea.hbm %s978_s0, 256  ;;  %p579_p4 = scmp.lt.u32.totalorder %s815_s30, %s978_s0 }
  0x1c   : > { %p576_p6 = pnand %p575_p5, %p574_p3  ;;  %p580_p10 = scmp.lt.u32.totalorder %s578_s16, %s573_s7 }
  0x1d   : > { %p582_p12 = scmp.lt.u32.totalorder %s573_s7, %s815_s30 }
  0x1e   : > { %p577_p7 = pneg %p576_p6  ;;  %p581_p13 = por %p580_p10, %p579_p4 }
  0x20   : > { %p583_p1 = por %p582_p12, %p581_p13 }
  0x22   : > { %p584_p2 = pnand %p583_p1, %p577_p7 }
  0x24   : > { %587 = shalt.err (!%p584_p2)
}
  0x25   : > { %s588_s20 = scalar_lea.vmem %s817_s4, 128  ;;  %s721_s26 = smov [#allocation3]  }
  0x26   : > { %p589_p3 = scmp.ne.s32.totalorder %s817_s4, %s588_s20  ;;  %s593_s27 = sshll.u32 %s721_s26, 4  ;;  %s594_s27 = int_to_ptr.vmem [resolvable:$false] %s593_s27 }
  0x27   : > { %s595_s28 = scalar_lea.vmem %s594_s27, 256  ;;  %p596_p9 = scmp.lt.s32.totalorder %s817_s4, %s594_s27 }
  0x28   : > { %p591_p6 = pnand %p589_p3, %p575_p5  ;;  %p597_p4 = scmp.lt.s32.totalorder %s595_s28, %s588_s20 }
  0x2a   : > { %p592_p11 = pneg %p591_p6  ;;  %p598_p10 = por %p597_p4, %p596_p9 }
  0x2c   : > { %p599_p12 = pnand %p598_p10, %p592_p11 }
  0x2e   : > { %602 = shalt.err (!%p599_p12)
}
  0x2f   : > { %504 = dma.hbm_to_vmem [thread:$0]  (!%p821_p0), %s815_s30, 128, %s817_s4, %s147_s6  }
  0x30   : > { %p988_p1 = scmp.lt.s32.totalorder %s719_s14, 3  ;;  %p989_p2 = scmp.ge.s32.totalorder %s719_s14, 1 }
  0x31   : > { %s484_s3 = sshll.u32 %s808_s25, 1  ;;  %s494_s7 = sshll.u32 %s715_s13, 5 }
  0x32   : > { %p857_p7 = pnand %p989_p2, %p988_p1  ;;  %s866_s16 = scalar_lea.hbm %s979_s1, %s494_s7 }
  0x33   : > { %s172_s18 = scalar_lea.vmem [#allocation6], %s484_s3  ;;  %s169_s30 = scalar_lea.sflag [#allocation7], %s808_s25 }
  0x34   : > { %s990_s29 = scalar_select %p857_p7, 1, 0 }
  0x35   : > { %s183_s19 = sshll.u32 %s172_s18, 4  ;;  %s603_s4 = scalar_lea.hbm %s866_s16, 32  ;;  %s184_s19 = int_to_ptr.vmem [resolvable:$true] %s183_s19 }
  0x36   : > { %p604_p9 = scmp.ne.s32.totalorder %s866_s16, %s603_s4  ;;  %s608_s26 = scalar_lea.hbm %s979_s1, 64 }
  0x37   : > { %p609_p3 = scmp.lt.u32.totalorder %s866_s16, %s979_s1  ;;  %p610_p6 = scmp.lt.u32.totalorder %s608_s26, %s603_s4 }
  0x38   : > { %p606_p11 = pnand %p604_p9, %p575_p5  ;;  %p612_p10 = scmp.lt.u32.totalorder %s603_s4, %s866_s16 }
  0x39   : > { %p611_p4 = por %p610_p6, %p609_p3 }
  0x3a   : > { %p607_p13 = pneg %p606_p11 }
  0x3b   : > { %p613_p12 = por %p612_p10, %p611_p4 }
  0x3d   : > { %p614_p1 = pnand %p613_p12, %p607_p13 }
  0x3f   : > { %617 = shalt.err (!%p614_p1)
}
  0x40   : > { %s618_s25 = scalar_lea.vmem %s184_s19, 32  ;;  %s722_s3 = smov [#allocation6]  }
  0x41   : > { %p619_p2 = scmp.ne.s32.totalorder %s184_s19, %s618_s25  ;;  %s623_s7 = sshll.u32 %s722_s3, 4  ;;  %s624_s7 = int_to_ptr.vmem [resolvable:$false] %s623_s7 }
  0x42   : > { %s625_s8 = scalar_lea.vmem %s624_s7, 64  ;;  %p626_p8 = scmp.lt.s32.totalorder %s184_s19, %s624_s7 }
  0x43   : > { %p621_p9 = pnand %p619_p2, %p575_p5  ;;  %p627_p7 = scmp.lt.s32.totalorder %s625_s8, %s618_s25 }
  0x45   : > { %p622_p11 = pneg %p621_p9  ;;  %p628_p3 = por %p627_p7, %p626_p8 }
  0x47   : > { %p629_p6 = pnand %p628_p3, %p622_p11 }
  0x49   : > { %632 = shalt.err (!%p629_p6)
}
  0x4a   : > { %507 = dma.hbm_to_vmem [thread:$0]  (!%p821_p0), %s866_s16, 32, %s184_s19, %s169_s30  }
  0x4b   : > { %p991_p13 = scmp.ne.s32.totalorder %s990_s29, 0 }
  0x4c   : > { %s891_s15 = sand.u32 (!%p991_p13), 1, %s703_s10   ;;  %p992_p5 = scmp.ne.s32.totalorder (!%p991_p13), %s984_s21, 0 }
  0x4d   : > { %192 = sbr.rel (%p991_p13) target bundleno = 184 (0xb8), region = 28  ;;  %s488_s18 = sshll.u32 (!%p991_p13), %s891_s15, 3 }
  0x4e   : > { %s195_s4 = scalar_lea.sflag (!%p991_p13), [#allocation4], %s891_s15  ;;  %s198_s6 = scalar_lea.vmem (!%p991_p13), [#allocation3], %s488_s18 }
  0x54   : > { %686 = dma.done.wait (%p992_p5), %s195_s4, 128  }
  0x55   : > { %688 = vsyncadd (%p992_p5), %s195_s4, 4294967168  ;;  %s489_s5 = sshll.u32 %s891_s15, 1  ;;  %s204_s29 = scalar_lea.sflag [#allocation7], %s891_s15 }
  0x56   : > { %s207_s16 = scalar_lea.vmem [#allocation6], %s489_s5 }
  0x57   : > { %690 = dma.done.wait (%p992_p5), %s204_s29, 32  }
  0x58   : > { %692 = vsyncadd (%p992_p5), %s204_s29, 4294967264  ;;  %s906_s19 = scalar_lea.vmem [#allocation8], %s891_s15  ;;  %v723_v0 = vmov 0.0   ;;  %vm257_vm0 = vcmask 1043456   ;;  %v242_v1 = vlaneseq  ;;  %v252_v2 = vld [vmem:[%s198_s6] sm:$0xff]  ;;  %vm343_vm2 = vcmask 1041408  }
  0x59   : > { %241 = vst [vmem:[%s906_s19] sm:$0x1] %v723_v0  ;;  %v255_v3 = vcombine.high %v252_v2, %v252_v2  ;;  %v258_v4 = vsel %vm257_vm0, %v252_v2, -inf  ;;  %v724_v6 = vmov 839922192   ;;  %v253_v19 = vld [vmem:[%s207_s16] sm:$0x3] }
  0x5a   : > { %v259_v5 = vrot.slane %v258_v4, 4  ;;  %v245_v7 = vunpack.c.l.s4 %v724_v6  ;;  %v911_v9 = vshrl.u32 %v242_v1, 7  ;;  %v725_v33 = vmov 0.025   ;;  %s490_s21 = sshll.u32 %s711_s12, 4  ;;  %s368_s30 = sshll.u32 %s906_s19, 4  ;;  %s930_s30 = int_to_ptr.vmem [resolvable:$true] %s368_s30 }
  0x5b   : > { %v265_v8 = vsel %vm257_vm0, %v255_v3, -inf  ;;  %v726_v1 = vmov 1935823168   ;;  %s928_s27 = scalar_lea.hbm %s980_s2, %s490_s21  ;;  %s355_s28 = scalar_lea.sflag [#allocation5], %s891_s15 }
  0x5c   : > { %v260_v10 = vmax.f32 %v258_v4, %v259_v5  ;;  %v266_v11 = vrot.slane %v265_v8, 4  ;;  %v246_v14 = vunpack.c.0.s8 %v245_v7  ;;  %v303_v17 = vsub.s32 0, %v911_v9  ;;  %s633_s25 = scalar_lea.vmem %s930_s30, 16  ;;  %p993_p0 = scmp.ne.s32.totalorder %s985_s22, 0 }
  0x5d   : > { %v307_v18 = vsub.s32 1, %v911_v9  ;;  %p634_p8 = scmp.ne.s32.totalorder %s930_s30, %s633_s25  ;;  %s727_s12 = smov [#allocation8]  }
  0x5e   : > { %v261_v12 = vrot.slane %v260_v10, 2  ;;  %v267_v13 = vmax.f32 %v265_v8, %v266_v11  ;;  %v249_v22 = vsub.s32 %v246_v14, %v911_v9  ;;  %v304_v25 = vrot.slane %v253_v19, %v303_v17  ;;  %s637_s3 = sshll.u32 %s727_s12, 4  ;;  %s638_s3 = int_to_ptr.vmem [resolvable:$false] %s637_s3 }
  0x5f   : > { %v308_v26 = vrot.slane %v253_v19, %v307_v18  ;;  %p635_p7 = pnand %p634_p8, %p993_p0  ;;  %s639_s7 = scalar_lea.vmem %s638_s3, 32 }
  0x60   : > { %v262_v15 = vmax.f32 %v260_v10, %v261_v12  ;;  %v268_v16 = vrot.slane %v267_v13, 2  ;;  %v250_v28 = vrot.slane %v911_v9, %v249_v22  ;;  %v351_v22 = vld [vmem:[%s906_s19] sm:$0x1]  ;;  %p640_p10 = scmp.lt.s32.totalorder %s930_s30, %s638_s3  ;;  %p641_p12 = scmp.lt.s32.totalorder %s639_s7, %s633_s25 }
  0x61   : > { %v309_v30 = vcombine.low %v304_v25, %v308_v26  ;;  %p636_p4 = pneg %p635_p7 }
  0x62   : > { %v263_v20 = vrot.slane %v262_v15, 1  ;;  %v269_v21 = vmax.f32 %v267_v13, %v268_v16  ;;  %p642_p1 = por %p641_p12, %p640_p10 }
  0x63   : > { %vm310_vm1 = vcmp.eq.s32.totalorder %v250_v28, %v309_v30 }
  0x64   : > { %v264_v23 = vmax.f32 %v262_v15, %v263_v20  ;;  %v270_v24 = vrot.slane %v269_v21, 1  ;;  %v311_v34 = vsel %vm310_vm1, 0.925, %v725_v33  ;;  %p643_p2 = pnand %p642_p1, %p636_p4 }
  0x66   : > { %v271_v27 = vmax.f32 %v269_v21, %v270_v24 }
  0x68   : > { %v274_v29 = vcombine.low %v264_v23, %v271_v27 }
  0x6a   : > { %v276_v31 = vsub.f32 %v252_v2, %v274_v29  ;;  %v337_v2 = vunpack.c.l.s4 %v726_v1 }
  0x6c   : > { %v277_v32 = vmul.f32 1.442695, %v276_v31  ;;  %v312_v35 = vmul.f32 %v311_v34, %v276_v31  ;;  %v338_v7 = vunpack.c.0.s8 %v337_v2 }
  0x6e   : > { %567 = vpow2.f32 %v277_v32  ;;  %v314_v36 = vcombine.high %v312_v35, %v312_v35  ;;  %v316_v38 = vsel %vm257_vm0, %v312_v35, 0.0  ;;  %v341_v13 = vsub.s32 %v338_v7, %v911_v9 }
  0x6f   : > { %v317_v44 = vrot.slane %v316_v38, 4 }
  0x70   : > { %v323_v42 = vsel %vm257_vm0, %v314_v36, 0.0 }
  0x71   : > { %v324_v47 = vrot.slane %v323_v42, 4  ;;  %v318_v50 = vadd.f32 %v317_v44, %v316_v38 }
  0x73   : > { %v325_v53 = vadd.f32 %v324_v47, %v323_v42  ;;  %v319_v56 = vrot.slane %v318_v50, 2 }
  0x75   : > { %v326_v59 = vrot.slane %v325_v53, 2  ;;  %v320_v61 = vadd.f32 %v319_v56, %v318_v50 }
  0x77   : > { %v327_v62 = vadd.f32 %v326_v59, %v325_v53  ;;  %v321_v63 = vrot.slane %v320_v61, 1 }
  0x78   : > { %v568_v37 = vpop.eup %567 }
  0x79   : > { %v280_v39 = vcombine.high %v568_v37, %v568_v37  ;;  %v282_v40 = vsel %vm257_vm0, %v568_v37, 0.0  ;;  %v328_v0 = vrot.slane %v327_v62, 1  ;;  %v322_v3 = vadd.f32 %v321_v63, %v320_v61 }
  0x7a   : > { %v283_v41 = vrot.slane %v282_v40, 4 }
  0x7b   : > { %v289_v43 = vsel %vm257_vm0, %v280_v39, 0.0  ;;  %v329_v6 = vadd.f32 %v328_v0, %v327_v62 }
  0x7c   : > { %v284_v45 = vadd.f32 %v283_v41, %v282_v40  ;;  %v290_v46 = vrot.slane %v289_v43, 4 }
  0x7e   : > { %v285_v48 = vrot.slane %v284_v45, 2  ;;  %v291_v49 = vadd.f32 %v290_v46, %v289_v43 }
  0x80   : > { %v286_v51 = vadd.f32 %v285_v48, %v284_v45  ;;  %v292_v52 = vrot.slane %v291_v49, 2 }
  0x82   : > { %v287_v54 = vrot.slane %v286_v51, 1  ;;  %v293_v55 = vadd.f32 %v292_v52, %v291_v49 }
  0x84   : > { %v288_v57 = vadd.f32 %v287_v54, %v286_v51  ;;  %v294_v58 = vrot.slane %v293_v55, 1 }
  0x86   : > { %v295_v60 = vadd.f32 %v294_v58, %v293_v55  ;;  %569 = vlog2.f32 %v288_v57 }
  0x88   : > { %571 = vlog2.f32 %v295_v60 }
  0x90   : > { %v570_v4 = vpop.eup %569 }
  0x91   : > { %v297_v5 = vmul.f32 0.6931472, %v570_v4 }
  0x92   : > { %v572_v8 = vpop.eup %571 }
  0x93   : > { %v299_v10 = vmul.f32 0.6931472, %v572_v8  ;;  %v330_v11 = vsub.f32 %v297_v5, %v322_v3 }
  0x95   : > { %v331_v12 = vsub.f32 %v299_v10, %v329_v6 }
  0x97   : > { %v334_v14 = vcombine.low %v330_v11, %v331_v12 }
  0x99   : > { %v342_v15 = vrot.slane %v334_v14, %v341_v13 }
  0x9b   : > { %v344_v16 = vsel %vm343_vm2, %v342_v15, 0.0 }
  0x9c   : > { %v345_v17 = vrot.slane %v344_v16, 4 }
  0x9e   : > { %v346_v18 = vadd.f32 %v345_v17, %v344_v16 }
  0xa0   : > { %v347_v19 = vrot.slane %v346_v18, 2 }
  0xa2   : > { %v348_v20 = vadd.f32 %v347_v19, %v346_v18 }
  0xa4   : > { %v349_v21 = vrot.slane %v348_v20, 1 }
  0xa6   : > { %v350_v23 = vadd.f32 %v349_v21, %v348_v20 }
  0xa8   : > { %v352_v24 = vadd.f32 %v351_v22, %v350_v23 }
  0xaa   : > { %353 = vst [vmem:[%s906_s19] sm:$0x1] %v352_v24 }
  0xab   : > { %646 = shalt.err (!%p643_p2)
}
  0xac   : > { %s647_s8 = scalar_lea.hbm %s928_s27, 16  ;;  %s651_s4 = scalar_lea.hbm %s980_s2, 32 }
  0xad   : > { %p648_p9 = scmp.ne.s32.totalorder %s928_s27, %s647_s8  ;;  %p652_p6 = scmp.lt.u32.totalorder %s928_s27, %s980_s2 }
  0xae   : > { %p653_p13 = scmp.lt.u32.totalorder %s651_s4, %s647_s8  ;;  %p655_p8 = scmp.lt.u32.totalorder %s647_s8, %s928_s27 }
  0xaf   : > { %p649_p11 = pnand %p648_p9, %p993_p0 }
  0xb0   : > { %p654_p5 = por %p653_p13, %p652_p6 }
  0xb1   : > { %p650_p3 = pneg %p649_p11 }
  0xb2   : > { %p656_p7 = por %p655_p8, %p654_p5 }
  0xb4   : > { %p657_p4 = pnand %p656_p7, %p650_p3 }
  0xb6   : > { %660 = shalt.err (!%p657_p4)
}
  0xb7   : > { %499 = dma.vmem_to_hbm [thread:$0]  (%p993_p0), %s930_s30, 16, %s928_s27, %s355_s28  }
  0xb8 PF: > { %s380_s29 = sand.u32 1, %s699_s9   ;;  %p994_p10 = scmp.ne.s32.totalorder %s986_s24, 0 }
  0xb9   : > { %p995_p12 = scmp.ge.s32.totalorder %s719_s14, 2  ;;  %s381_s16 = scalar_lea.sflag [#allocation5], %s380_s29 }
  0xbb   : > { %p509_p1 = pnand %p995_p12, %p994_p10 }
  0xbd   : > { %694 = dma.done.wait (!%p509_p1), %s381_s16, 16  }
  0xbe   : > { %696 = vsyncadd (!%p509_p1), %s381_s16, 4294967280  ;;  %s21_s14 = sadd.s32 1, %s719_s14   ;;  %s996_s9 = smov %s703_s10 }
  0xbf   : > { %p18_p2 = scmp.ge.s32.totalorder %s21_s14, 4   ;;  %s997_s10 = smov %s707_s11 }
  0xc0   : > { %s998_s11 = smov %s799_s23  ;;  %s999_s12 = smov %s715_s13 }
  0xc1   : > { %s1000_s13 = smov %s1002_s17  ;;  %20 = sbr.rel (!%p18_p2) target bundleno = 8 (0x8), region = 90 }
  0xc8   :  { %385 = vsyncpa [#allocation4], 1 }
  0xc9   :  { %387 = vsyncpa [#allocation4 + $0x1], 1 }
  0xca   :  { %388 = vsyncpa [#allocation7], 1 }
  0xcb   :  { %390 = vsyncpa [#allocation7 + $0x1], 1 }
  0xcc   :  { %391 = vsyncpa [#allocation5], 1 }
  0xcd   :  { %393 = vsyncpa [#allocation5 + $0x1], 1 }

</bundles_post_ra>
